<compile_context>
chip_gen: v6e
topology: v6e:2x2x1
jax: 0.10.0
libtpu: 0.0.40
codegen_flags: <defaults>
</compile_context>

<pallas_src>
import functools

import jax
import jax.numpy as jnp
import numpy as np
from jax.experimental import pallas as pl
from jax.experimental.pallas import tpu as pltpu


def _round_up(x, m):
    return ((x + m - 1) // m) * m


def _ce_kernel(logits_ref, target_ref, weights_ref, loss_ref,
               m_sc, l_sc, picked_sc, sum_sc,
               *, label_smoothing, num_classes, class_tile, mask_classes):
    k = pl.program_id(1)
    nk = pl.num_programs(1)

    @pl.when(k == 0)
    def _():
        m_sc[...] = jnp.full_like(m_sc, -jnp.inf)
        l_sc[...] = jnp.zeros_like(l_sc)
        picked_sc[...] = jnp.zeros_like(picked_sc)
        sum_sc[...] = jnp.zeros_like(sum_sc)

    # Load native-dtype tile (e.g. bf16 in HBM), accumulate in f32.
    x = logits_ref[...].astype(jnp.float32)            # (TB, TC)
    tgt = target_ref[...]                               # (TB, 1) int32

    # Global class ids for this tile.
    cls_ids = jax.lax.broadcasted_iota(jnp.int32, x.shape, 1) + k * class_tile

    if mask_classes:
        valid = cls_ids < num_classes
        x_lse = jnp.where(valid, x, -jnp.inf)            # padded cols -> -inf
        x_sum = jnp.where(valid, x, 0.0)                 # padded cols -> 0
    else:
        x_lse = x
        x_sum = x

    # Online (streaming) logsumexp over class tiles.
    tile_max = jnp.max(x_lse, axis=1, keepdims=True)     # (TB, 1)
    m_new = jnp.maximum(m_sc[...], tile_max)
    alpha = jnp.exp(m_sc[...] - m_new)
    l_sc[...] = alpha * l_sc[...] + jnp.sum(jnp.exp(x_lse - m_new),
                                            axis=1, keepdims=True)
    m_sc[...] = m_new

    # Selected logit via compare+select; padded class ids are >= num_classes
    # so they never match a valid target.
    picked_sc[...] += jnp.sum(jnp.where(cls_ids == tgt, x, 0.0),
                              axis=1, keepdims=True)

    if label_smoothing != 0.0:
        sum_sc[...] += jnp.sum(x_sum, axis=1, keepdims=True)

    @pl.when(k == nk - 1)
    def _():
        lse = m_sc[...] + jnp.log(l_sc[...])
        loss = lse - (1.0 - label_smoothing) * picked_sc[...]
        if label_smoothing != 0.0:
            loss = loss - label_smoothing * (sum_sc[...] * (1.0 / num_classes))
        loss = loss * weights_ref[...]
        loss_ref[...] = loss.astype(loss_ref.dtype)


def cross_entropy_loss(logits, target, weights=None, *,
                       aggregate="mean", label_smoothing=0.0,
                       batch_tile=None, class_tile=None):
    """JAX/Pallas equivalent of CrossEntropyLoss.forward."""
    assert aggregate in ("sum", "mean", None)
    assert logits.ndim == 2
    if target.ndim == 2:
        target = target[:, 0]
    assert target.ndim == 1

    B, C = logits.shape

    tgt2d = target.astype(jnp.int32).reshape(B, 1)
    if weights is None:
        w2d = jnp.ones((B, 1), dtype=jnp.float32)
    else:
        assert weights.shape == (B,)
        w2d = weights.astype(jnp.float32).reshape(B, 1)

    # --- tile sizes -----------------------------------------------------
    # Batch tile: multiple of 8 sublanes, capped so the f32 tile stays small.
    TB = batch_tile if batch_tile is not None else min(512, _round_up(B, 8))
    # Class tile: full class dim if small, else a lane-aligned 2048 strip.
    if class_tile is None:
        TC = C if C <= 2048 else 2048
    else:
        TC = class_tile
    assert TC == C or TC % 128 == 0, "class tile must span C or be 128-aligned"
    assert TB == B or TB % 8 == 0, "batch tile must span B or be 8-aligned"

    nb = pl.cdiv(B, TB)
    nc = pl.cdiv(C, TC)
    mask_classes = (C % TC) != 0

    kernel = functools.partial(
        _ce_kernel,
        label_smoothing=float(label_smoothing),
        num_classes=C,
        class_tile=TC,
        mask_classes=mask_classes,
    )

    loss2d = pl.pallas_call(
        kernel,
        out_shape=jax.ShapeDtypeStruct((B, 1), jnp.float32),
        grid_spec=pltpu.PrefetchScalarGridSpec(
            num_scalar_prefetch=0,
            grid=(nb, nc),
            in_specs=[
                pl.BlockSpec((TB, TC), lambda i, k: (i, k)),   # logits (native dtype)
                pl.BlockSpec((TB, 1), lambda i, k: (i, 0)),    # target
                pl.BlockSpec((TB, 1), lambda i, k: (i, 0)),    # weights
            ],
            out_specs=pl.BlockSpec((TB, 1), lambda i, k: (i, 0)),
            scratch_shapes=[pltpu.VMEM((TB, 1), jnp.float32)] * 4,
        ),
        compiler_params=pltpu.CompilerParams(
            dimension_semantics=("parallel", "arbitrary")),
    )(logits, tgt2d, w2d)

    # TODO(synk): for aggregate='sum'/'mean' a per-tile partial-sum output
    # (tiny, lane-dense) would also fold the final reduction into the kernel.
    loss = loss2d[:, 0]                              # (B,) per-sample loss
    if aggregate == "sum":
        return jnp.sum(loss)
    elif aggregate == "mean":
        return jnp.mean(loss)
    else:
        return loss


def _reference(logits, target, weights, label_smoothing, aggregate):
    logits = logits.astype(jnp.float32)
    lse = jax.scipy.special.logsumexp(logits, axis=1)
    picked = jnp.take_along_axis(logits, target[:, None], axis=1)[:, 0]
    loss = (lse
            - (1.0 - label_smoothing) * picked
            - label_smoothing * jnp.mean(logits, axis=1))
    if weights is not None:
        loss = loss * weights
    if aggregate == "mean":
        return jnp.mean(loss)
    if aggregate == "sum":
        return jnp.sum(loss)
    return loss


if __name__ == "__main__":
    key = jax.random.PRNGKey(0)
    k1, k2, k3 = jax.random.split(key, 3)

    # Small, deliberately non-tile-aligned shapes: B=10 (not /8), C=200
    # (not /128), class_tile=128 forces multiple class tiles + in-kernel
    # masking of the padded columns.  Single compile to keep the run short.
    B, C = 10, 200
    logits = jax.random.normal(k1, (B, C), dtype=jnp.float32)
    target = jax.random.randint(k2, (B,), 0, C, dtype=jnp.int32)
    weights = jax.random.uniform(k3, (B,), dtype=jnp.float32)

    out = cross_entropy_loss(logits, target, weights,
                             aggregate="mean", label_smoothing=0.1,
                             class_tile=128)
    out = jax.block_until_ready(out)
    ref = jax.block_until_ready(
        _reference(logits, target, weights, 0.1, "mean"))
    assert np.allclose(np.asarray(out), np.asarray(ref),
                       rtol=1e-5, atol=1e-5), (out, ref)

    print("KERNEL_OK")
</pallas_src>

<mosaic_0001>
module attributes {stable_mosaic.version = 11 : i64} {
  func.func @_ce_kernel(%arg0: i32, %arg1: i32, %arg2: memref<16x128xf32, #tpu.memory_space<vmem>>, %arg3: memref<16x1xi32, #tpu.memory_space<vmem>>, %arg4: memref<16x1xf32, #tpu.memory_space<vmem>>, %arg5: memref<16x1xf32, #tpu.memory_space<vmem>>, %arg6: memref<16x1xf32, #tpu.memory_space<vmem>>, %arg7: memref<16x1xf32, #tpu.memory_space<vmem>>, %arg8: memref<16x1xf32, #tpu.memory_space<vmem>>, %arg9: memref<16x1xf32, #tpu.memory_space<vmem>>) attributes {dimension_semantics = [#tpu.dimension_semantics<parallel>, #tpu.dimension_semantics<arbitrary>], iteration_bounds = array<i64: 1, 2>, scalar_prefetch = 0 : i64, scratch_operands = 4 : i64, tpu.core_type = #tpu.core_type<tc>, window_params = [{transform_indices = @transform_0, window_bounds = array<i64: 16, 128>}, {transform_indices = @transform_1, window_bounds = array<i64: 16, 1>}, {transform_indices = @transform_2, window_bounds = array<i64: 16, 1>}, {transform_indices = @transform_3, window_bounds = array<i64: 16, 1>}]} {
    %c0_i32 = arith.constant 0 : i32
    %0 = arith.cmpi eq, %arg1, %c0_i32 : i32
    %1 = arith.extui %0 : i1 to i32
    %c0_i32_0 = arith.constant 0 : i32
    %2 = arith.cmpi ne, %1, %c0_i32_0 : i32
    scf.if %2 {
      %cst_29 = arith.constant 0xFF800000 : f32
      %49 = vector.broadcast %cst_29 : f32 to vector<16x1xf32>
      %c0_30 = arith.constant 0 : index
      %c0_31 = arith.constant 0 : index
      %50 = vector.load %arg6[%c0_30, %c0_31] : memref<16x1xf32, #tpu.memory_space<vmem>>, vector<16x1xf32>
      tpu.vector_store %arg6[%c0_30, %c0_31], %49 {strides = array<i32>} : memref<16x1xf32, #tpu.memory_space<vmem>>, vector<16x1xf32>,
      %cst_32 = arith.constant 0.000000e+00 : f32
      %51 = vector.broadcast %cst_32 : f32 to vector<16x1xf32>
      %c0_33 = arith.constant 0 : index
      %c0_34 = arith.constant 0 : index
      %52 = vector.load %arg7[%c0_33, %c0_34] : memref<16x1xf32, #tpu.memory_space<vmem>>, vector<16x1xf32>
      tpu.vector_store %arg7[%c0_33, %c0_34], %51 {strides = array<i32>} : memref<16x1xf32, #tpu.memory_space<vmem>>, vector<16x1xf32>,
      %cst_35 = arith.constant 0.000000e+00 : f32
      %53 = vector.broadcast %cst_35 : f32 to vector<16x1xf32>
      %c0_36 = arith.constant 0 : index
      %c0_37 = arith.constant 0 : index
      %54 = vector.load %arg8[%c0_36, %c0_37] : memref<16x1xf32, #tpu.memory_space<vmem>>, vector<16x1xf32>
      tpu.vector_store %arg8[%c0_36, %c0_37], %53 {strides = array<i32>} : memref<16x1xf32, #tpu.memory_space<vmem>>, vector<16x1xf32>,
      %cst_38 = arith.constant 0.000000e+00 : f32
      %55 = vector.broadcast %cst_38 : f32 to vector<16x1xf32>
      %c0_39 = arith.constant 0 : index
      %c0_40 = arith.constant 0 : index
      %56 = vector.load %arg9[%c0_39, %c0_40] : memref<16x1xf32, #tpu.memory_space<vmem>>, vector<16x1xf32>
      tpu.vector_store %arg9[%c0_39, %c0_40], %55 {strides = array<i32>} : memref<16x1xf32, #tpu.memory_space<vmem>>, vector<16x1xf32>,
    } else {
    }
    %c0 = arith.constant 0 : index
    %c0_1 = arith.constant 0 : index
    %3 = vector.load %arg2[%c0, %c0_1] : memref<16x128xf32, #tpu.memory_space<vmem>>, vector<16x128xf32>
    %c0_2 = arith.constant 0 : index
    %c0_3 = arith.constant 0 : index
    %4 = vector.load %arg3[%c0_2, %c0_3] : memref<16x1xi32, #tpu.memory_space<vmem>>, vector<16x1xi32>
    %5 = tpu.iota {dimensions = array<i32: 1>} : vector<16x128xi32>
    %c128_i32 = arith.constant 128 : i32
    %6 = arith.muli %arg1, %c128_i32 : i32
    %7 = vector.broadcast %6 : i32 to vector<16x128xi32>
    %8 = arith.addi %5, %7 : vector<16x128xi32>
    %c200_i32 = arith.constant 200 : i32
    %9 = vector.broadcast %c200_i32 : i32 to vector<16x128xi32>
    %10 = arith.cmpi slt, %8, %9 : vector<16x128xi32>
    %cst = arith.constant 0xFF800000 : f32
    %11 = vector.broadcast %cst : f32 to vector<16x128xf32>
    %12 = arith.select %10, %3, %11 : vector<16x128xi1>, vector<16x128xf32>
    %cst_4 = arith.constant 0.000000e+00 : f32
    %13 = vector.broadcast %cst_4 : f32 to vector<16x128xf32>
    %14 = arith.select %10, %3, %13 : vector<16x128xi1>, vector<16x128xf32>
    %cst_5 = arith.constant dense<0xFF800000> : vector<16xf32>
    %15 = vector.multi_reduction <maximumf>, %12, %cst_5 [1] : vector<16x128xf32> to vector<16xf32>
    %16 = vector.shape_cast %15 : vector<16xf32> to vector<16x1xf32>
    %c0_6 = arith.constant 0 : index
    %c0_7 = arith.constant 0 : index
    %17 = vector.load %arg6[%c0_6, %c0_7] : memref<16x1xf32, #tpu.memory_space<vmem>>, vector<16x1xf32>
    %18 = arith.maximumf %17, %16 : vector<16x1xf32>
    %c0_8 = arith.constant 0 : index
    %c0_9 = arith.constant 0 : index
    %19 = vector.load %arg6[%c0_8, %c0_9] : memref<16x1xf32, #tpu.memory_space<vmem>>, vector<16x1xf32>
    %20 = arith.subf %19, %18 : vector<16x1xf32>
    %21 = math.exp %20 : vector<16x1xf32>
    %c0_10 = arith.constant 0 : index
    %c0_11 = arith.constant 0 : index
    %22 = vector.load %arg7[%c0_10, %c0_11] : memref<16x1xf32, #tpu.memory_space<vmem>>, vector<16x1xf32>
    %23 = arith.mulf %21, %22 : vector<16x1xf32>
    %24 = vector.broadcast %18 : vector<16x1xf32> to vector<16x128xf32>
    %25 = arith.subf %12, %24 : vector<16x128xf32>
    %26 = math.exp %25 : vector<16x128xf32>
    %cst_12 = arith.constant dense<0.000000e+00> : vector<16xf32>
    %27 = vector.multi_reduction <add>, %26, %cst_12 [1] : vector<16x128xf32> to vector<16xf32>
    %28 = vector.shape_cast %27 : vector<16xf32> to vector<16x1xf32>
    %29 = arith.addf %23, %28 : vector<16x1xf32>
    %c0_13 = arith.constant 0 : index
    %c0_14 = arith.constant 0 : index
    %30 = vector.load %arg7[%c0_13, %c0_14] : memref<16x1xf32, #tpu.memory_space<vmem>>, vector<16x1xf32>
    tpu.vector_store %arg7[%c0_13, %c0_14], %29 {strides = array<i32>} : memref<16x1xf32, #tpu.memory_space<vmem>>, vector<16x1xf32>,
    %c0_15 = arith.constant 0 : index
    %c0_16 = arith.constant 0 : index
    %31 = vector.load %arg6[%c0_15, %c0_16] : memref<16x1xf32, #tpu.memory_space<vmem>>, vector<16x1xf32>
    tpu.vector_store %arg6[%c0_15, %c0_16], %18 {strides = array<i32>} : memref<16x1xf32, #tpu.memory_space<vmem>>, vector<16x1xf32>,
    %c0_17 = arith.constant 0 : index
    %c0_18 = arith.constant 0 : index
    %32 = vector.load %arg8[%c0_17, %c0_18] : memref<16x1xf32, #tpu.memory_space<vmem>>, vector<16x1xf32>
    %33 = vector.broadcast %4 : vector<16x1xi32> to vector<16x128xi32>
    %34 = arith.cmpi eq, %8, %33 : vector<16x128xi32>
    %cst_19 = arith.constant 0.000000e+00 : f32
    %35 = vector.broadcast %cst_19 : f32 to vector<16x128xf32>
    %36 = arith.select %34, %3, %35 : vector<16x128xi1>, vector<16x128xf32>
    %cst_20 = arith.constant dense<0.000000e+00> : vector<16xf32>
    %37 = vector.multi_reduction <add>, %36, %cst_20 [1] : vector<16x128xf32> to vector<16xf32>
    %38 = vector.shape_cast %37 : vector<16xf32> to vector<16x1xf32>
    %39 = arith.addf %32, %38 : vector<16x1xf32>
    %c0_21 = arith.constant 0 : index
    %c0_22 = arith.constant 0 : index
    %40 = vector.load %arg8[%c0_21, %c0_22] : memref<16x1xf32, #tpu.memory_space<vmem>>, vector<16x1xf32>
    tpu.vector_store %arg8[%c0_21, %c0_22], %39 {strides = array<i32>} : memref<16x1xf32, #tpu.memory_space<vmem>>, vector<16x1xf32>,
    %c0_23 = arith.constant 0 : index
    %c0_24 = arith.constant 0 : index
    %41 = vector.load %arg9[%c0_23, %c0_24] : memref<16x1xf32, #tpu.memory_space<vmem>>, vector<16x1xf32>
    %cst_25 = arith.constant dense<0.000000e+00> : vector<16xf32>
    %42 = vector.multi_reduction <add>, %14, %cst_25 [1] : vector<16x128xf32> to vector<16xf32>
    %43 = vector.shape_cast %42 : vector<16xf32> to vector<16x1xf32>
    %44 = arith.addf %41, %43 : vector<16x1xf32>
    %c0_26 = arith.constant 0 : index
    %c0_27 = arith.constant 0 : index
    %45 = vector.load %arg9[%c0_26, %c0_27] : memref<16x1xf32, #tpu.memory_space<vmem>>, vector<16x1xf32>
    tpu.vector_store %arg9[%c0_26, %c0_27], %44 {strides = array<i32>} : memref<16x1xf32, #tpu.memory_space<vmem>>, vector<16x1xf32>,
    %c1_i32 = arith.constant 1 : i32
    %46 = arith.cmpi eq, %arg1, %c1_i32 : i32
    %47 = arith.extui %46 : i1 to i32
    %c0_i32_28 = arith.constant 0 : i32
    %48 = arith.cmpi ne, %47, %c0_i32_28 : i32
    scf.if %48 {
      %c0_29 = arith.constant 0 : index
      %c0_30 = arith.constant 0 : index
      %49 = vector.load %arg6[%c0_29, %c0_30] : memref<16x1xf32, #tpu.memory_space<vmem>>, vector<16x1xf32>
      %c0_31 = arith.constant 0 : index
      %c0_32 = arith.constant 0 : index
      %50 = vector.load %arg7[%c0_31, %c0_32] : memref<16x1xf32, #tpu.memory_space<vmem>>, vector<16x1xf32>
      %51 = math.log %50 : vector<16x1xf32>
      %52 = arith.addf %49, %51 : vector<16x1xf32>
      %c0_33 = arith.constant 0 : index
      %c0_34 = arith.constant 0 : index
      %53 = vector.load %arg8[%c0_33, %c0_34] : memref<16x1xf32, #tpu.memory_space<vmem>>, vector<16x1xf32>
      %cst_35 = arith.constant 0.899999976 : f32
      %54 = vector.broadcast %cst_35 : f32 to vector<16x1xf32>
      %55 = arith.mulf %54, %53 : vector<16x1xf32>
      %56 = arith.subf %52, %55 : vector<16x1xf32>
      %c0_36 = arith.constant 0 : index
      %c0_37 = arith.constant 0 : index
      %57 = vector.load %arg9[%c0_36, %c0_37] : memref<16x1xf32, #tpu.memory_space<vmem>>, vector<16x1xf32>
      %cst_38 = arith.constant 5.000000e-03 : f32
      %58 = vector.broadcast %cst_38 : f32 to vector<16x1xf32>
      %59 = arith.mulf %57, %58 : vector<16x1xf32>
      %cst_39 = arith.constant 1.000000e-01 : f32
      %60 = vector.broadcast %cst_39 : f32 to vector<16x1xf32>
      %61 = arith.mulf %60, %59 : vector<16x1xf32>
      %62 = arith.subf %56, %61 : vector<16x1xf32>
      %c0_40 = arith.constant 0 : index
      %c0_41 = arith.constant 0 : index
      %63 = vector.load %arg4[%c0_40, %c0_41] : memref<16x1xf32, #tpu.memory_space<vmem>>, vector<16x1xf32>
      %64 = arith.mulf %62, %63 : vector<16x1xf32>
      %c0_42 = arith.constant 0 : index
      %c0_43 = arith.constant 0 : index
      %65 = vector.load %arg5[%c0_42, %c0_43] : memref<16x1xf32, #tpu.memory_space<vmem>>, vector<16x1xf32>
      tpu.vector_store %arg5[%c0_42, %c0_43], %64 {strides = array<i32>} : memref<16x1xf32, #tpu.memory_space<vmem>>, vector<16x1xf32>,
    } else {
    }
    return
  }
  func.func @transform_0(%arg0: i32, %arg1: i32) -> (i32, i32) {
    %c0_i32 = arith.constant 0 : i32
    return %arg0, %arg1 : i32, i32
  }
  func.func @transform_1(%arg0: i32, %arg1: i32) -> (i32, i32) {
    %c0_i32 = arith.constant 0 : i32
    %c0_i32_0 = arith.constant 0 : i32
    return %arg0, %c0_i32 : i32, i32
  }
  func.func @transform_2(%arg0: i32, %arg1: i32) -> (i32, i32) {
    %c0_i32 = arith.constant 0 : i32
    %c0_i32_0 = arith.constant 0 : i32
    return %arg0, %c0_i32 : i32, i32
  }
  func.func @transform_3(%arg0: i32, %arg1: i32) -> (i32, i32) {
    %c0_i32 = arith.constant 0 : i32
    %c0_i32_0 = arith.constant 0 : i32
    return %arg0, %c0_i32 : i32, i32
  }
}

</mosaic_0001>

<bundles_post_ra>
// kernel: tpu_custom_call.1
= control target key start
LH: loop header
LB: loop body
LE: loop exit
PB: predicated region body
PF: predicated region fallthrough
CT: control target
= control target key end

     0   :  { %s645_s12 = smov 0   ;;  %s647_s13 = smov 0   ;;  %s741_s0 = inlined_call_operand.vmem [shape: f32[10,200], index: 0, kind: input, shape index: {}]   ;;  %s742_s1 = inlined_call_operand.vmem [shape: s32[10,1], index: 1, kind: input, shape index: {}]   ;;  %s743_s2 = inlined_call_operand.vmem [shape: f32[10,1], index: 2, kind: input, shape index: {}]   ;;  %s744_s3 = inlined_call_operand.vmem [shape: f32[10,1], index: 3, kind: output, shape index: {}]  }
   0x1   :  { %s649_s14 = smov 0   ;;  %s651_s15 = smov 0  }
   0x2   :  { %s653_s16 = smov 0  }
   0x3 LB: > { %s22_s17 = sadd.s32 1, %s616_s15  ;;  %p41_p1 = scmp.ne.s32.totalorder %s608_s13, %s604_s12  ;;  %s620_s16 = sphi %s653_s16, %s13_s16   ;;  %s616_s15 = sphi %s651_s15, %s748_s15   ;;  %s612_s14 = sphi %s649_s14, %s747_s14   ;;  %s608_s13 = sphi %s647_s13, %s746_s13   ;;  %s604_s12 = sphi %s645_s12, %s745_s12  }
   0x4   : > { %p23_p0 = scmp.ge.s32.totalorder %s22_s17, 2  ;;  %p42_p2 = scmp.eq.s32.totalorder %s620_s16, 0 }
   0x5   : > { %s34_s19 = sadd.s32 1, %s608_s13  ;;  %p513_p5 = scmp.ge.s32.totalorder %s620_s16, 2 }
   0x6   : > { %s750_s17 = smov (%p23_p0, %s22_s17), 0  ;;  %p43_p3 = por %p42_p2, %p41_p1 }
   0x7   : > { %s30_s18 = ssub.s32 %s616_s15, %s750_s17  ;;  %163 = sbr.rel (%p513_p5) target bundleno = 17 (0x11), region = 24 }
   0x8   : > { %p32_p4 = scmp.eq.s32.totalorder %s30_s18, 0 }
   0xa   : > { %s680_s20 = scalar_select %p32_p4, %s608_s13, %s34_s19  }
   0xc   : > { %166 = sbr.rel (!%p43_p3) target bundleno = 17 (0x11), region = 28  ;;  %s168_s21 = sand.u32 (%p43_p3), 1, %s608_s13  }
   0xd   : > { %s515_s22 = sshll.u32 (%p43_p3), %s616_s15, 3  ;;  %s514_s23 = sshll.u32 (%p43_p3), %s168_s21, 4 }
   0xe   : > { %s175_s26 = scalar_lea.vmem (%p43_p3), %s741_s0, %s515_s22  ;;  %s170_s27 = scalar_lea.vmem (%p43_p3), [#allocation6], %s514_s23 }
   0xf   : > { %v206_v0 = vld [vmem:[%s175_s26] sm:$0xff] (%p43_p3)  ;;  %v208_v1 = vld [vmem:[%s175_s26 + $0x10] sm:$0xff] (%p43_p3) }
  0x10   : > { %207 = vst [vmem:[%s170_s27] sm:$0xff] (%p43_p3), %v206_v0  ;;  %209 = vst [vmem:[%s170_s27 + $0x8] sm:$0xff] (%p43_p3), %v208_v1 }
  0x11 PF: > { %p516_p6 = scmp.ge.s32.totalorder %s620_s16, 1  ;;  %p214_p7 = scmp.lt.s32.totalorder %s620_s16, 3 }
  0x13   : > { %p215_p8 = pnand %p516_p6, %p214_p7 }
  0x14   : > { %s221_s28 = sand.u32 (!%p215_p8), 1, %s604_s12   ;;  %p518_p9 = scmp.ne.s32.totalorder (!%p215_p8), %s612_s14, 0 }
  0x15   : > { %218 = sbr.rel (%p215_p8) target bundleno = 503 (0x1f7), region = 66  ;;  %s517_s29 = sshll.u32 (!%p215_p8), %s221_s28, 4 }
  0x16   : > { %s223_s30 = scalar_lea.vmem (!%p215_p8), [#allocation6], %s517_s29 }
  0x1a   : > { %276 = sbr.rel (%p518_p9) target bundleno = 36 (0x24), region = 74 }
  0x1f   : > { %vm277_vm0 = vcmask 7168   ;;  %v622_v2 = vmov -inf   ;;  %v623_v3 = vmov 0.0  }
  0x20   : > { %278 = vst.msk [vmem:[#allocation2] sm:$0xff] %vm277_vm0, %v622_v2  ;;  %279 = vst.msk [vmem:[#allocation2 + $0x8] sm:$0xff] %vm277_vm0, %v622_v2 }
  0x21   : > { %280 = vst.msk [vmem:[#allocation3] sm:$0xff] %vm277_vm0, %v623_v3  ;;  %281 = vst.msk [vmem:[#allocation3 + $0x8] sm:$0xff] %vm277_vm0, %v623_v3 }
  0x22   : > { %282 = vst.msk [vmem:[#allocation4] sm:$0xff] %vm277_vm0, %v623_v3  ;;  %283 = vst.msk [vmem:[#allocation4 + $0x8] sm:$0xff] %vm277_vm0, %v623_v3 }
  0x23   : > { %284 = vst.msk [vmem:[#allocation5] sm:$0xff] %vm277_vm0, %v623_v3  ;;  %285 = vst.msk [vmem:[#allocation5 + $0x8] sm:$0xff] %vm277_vm0, %v623_v3 }
  0x24 PF: > { %v290_v4 = vlaneseq  ;;  %s519_s4 = sshll.u32 %s612_s14, 7  ;;  %v286_v7 = vld [vmem:[%s223_s30] sm:$0xff]  ;;  %v287_v9 = vld [vmem:[%s223_s30 + $0x8] sm:$0xff]  ;;  %v624_v12 = vmov 0   ;;  %vm340_vm2 = vcmask 7168   ;;  %p520_p10 = scmp.ne.s32.totalorder %s612_s14, 1 }
  0x25   : > { %v293_v5 = vstv %s519_s4  ;;  %568 = vset.pattern.permute.xlu1 %v624_v12  ;;  %569 = vset.pattern.permute.xlu0 %v624_v12  ;;  %v288_v13 = vld [vmem:[%s742_s1] sm:$0xff]  ;;  %v289_v22 = vld [vmem:[%s742_s1 + $0x8] sm:$0xff] }
  0x26   : > { %v291_v6 = vand.u32 127, %v290_v4 }
  0x27   : > { %v304_v14 = vld [vmem:[#allocation2] sm:$0xff]  ;;  %v305_v17 = vld [vmem:[#allocation2 + $0x8] sm:$0xff] }
  0x28   : > { %v294_v8 = vadd.s32 %v293_v5, %v291_v6  ;;  %v314_v48 = vld [vmem:[#allocation3] sm:$0xff]  ;;  %v315_v53 = vld [vmem:[#allocation3 + $0x8] sm:$0xff] }
  0x29   : > { %v345_v37 = vld [vmem:[#allocation4] sm:$0xff]  ;;  %v346_v42 = vld [vmem:[#allocation4 + $0x8] sm:$0xff] }
  0x2a   : > { %vm295_vm1 = vcmp.lt.s32.totalorder %v294_v8, 200  ;;  %v365_v45 = vld [vmem:[#allocation5] sm:$0xff]  ;;  %v366_v58 = vld [vmem:[#allocation5 + $0x8] sm:$0xff] }
  0x2b   : > { %v296_v10 = vsel %vm295_vm1, %v286_v7, -inf  ;;  %v297_v11 = vsel %vm295_vm1, %v287_v9, -inf  ;;  %v298_v33 = vsel %vm295_vm1, %v286_v7, 0.0  ;;  %v299_v36 = vsel %vm295_vm1, %v287_v9, 0.0 }
  0x2c   : > { %300 = vmax.xlane.f32.xlu0 %v296_v10 }
  0x30   : > { %302 = vmax.xlane.f32.xlu0 %v297_v11 }
  0x46   : > { %348 = vperm.xlu0 %569, %v288_v13  }
  0xb5   : > { %v301_v15 = vpop.xlane.xlu0 %300 }
  0xb6   : > { %v306_v16 = vmax.f32 %v304_v14, %v301_v15 }
  0xb8   : > { %v308_v18 = vsub.f32 %v304_v14, %v306_v16  ;;  %343 = vst.msk [vmem:[#allocation2] sm:$0xff] %vm340_vm2, %v306_v16  ;;  %320 = vperm.xlu1 %568, %v306_v16  }
  0xb9   : > { %v303_v19 = vpop.xlane.xlu0 %302 }
  0xba   : > { %v307_v20 = vmax.f32 %v305_v17, %v303_v19  ;;  %v310_v40 = vmul.f32 1.442695, %v308_v18 }
  0xbc   : > { %v309_v21 = vsub.f32 %v305_v17, %v307_v20  ;;  %344 = vst.msk [vmem:[#allocation2 + $0x8] sm:$0xff] %vm340_vm2, %v307_v20  ;;  %325 = vperm.xlu1 %568, %v307_v20  }
  0xbe   : > { %v312_v41 = vmul.f32 1.442695, %v309_v21 }
  0xc0   : > { %351 = vperm.xlu1 %568, %v289_v22  }
  0xc1   : > { %v349_v23 = vpop.permute.xlu0 %348 }
  0xc2   : > { %vm353_vm3 = vcmp.eq.s32.totalorder %v294_v8, %v349_v23 }
  0xc3   : > { %v355_v24 = vsel %vm353_vm3, %v286_v7, 0.0 }
  0xc4   : > { %357 = vadd.xlane.f32.xlu0 %v355_v24 }
 0x133   : > { %v321_v25 = vpop.permute.xlu1 %320 }
 0x134   : > { %v328_v26 = vsub.f32 %v296_v10, %v321_v25 }
 0x136   : > { %v330_v27 = vmul.f32 1.442695, %v328_v26 }
 0x137   : > { %v326_v28 = vpop.permute.xlu1 %325 }
 0x138   : > { %570 = vpow2.f32 %v330_v27  ;;  %v329_v29 = vsub.f32 %v297_v11, %v326_v28 }
 0x13a   : > { %v332_v30 = vmul.f32 1.442695, %v329_v29 }
 0x13b   : > { %v352_v31 = vpop.permute.xlu1 %351 }
 0x13c   : > { %572 = vpow2.f32 %v332_v30  ;;  %vm354_vm4 = vcmp.eq.s32.totalorder %v294_v8, %v352_v31 }
 0x13d   : > { %v356_v32 = vsel %vm354_vm4, %v287_v9, 0.0  ;;  %574 = vpow2.f32 %v310_v40 }
 0x13e   : > { %359 = vadd.xlane.f32.xlu1 %v356_v32  ;;  %576 = vpow2.f32 %v312_v41 }
 0x142   : > { %367 = vadd.xlane.f32.xlu1 %v298_v33 }
 0x145   : > { %v571_v34 = vpop.eup %570 }
 0x146   : > { %334 = vadd.xlane.f32.xlu1 %v571_v34 }
 0x149   : > { %v573_v35 = vpop.eup %572 }
 0x14a   : > { %336 = vadd.xlane.f32.xlu1 %v573_v35  ;;  %v575_v46 = vpop.eup %574 }
 0x14b   : > { %v316_v50 = vmul.f32 %v575_v46, %v314_v48  ;;  %v577_v51 = vpop.eup %576 }
 0x14c   : > { %v317_v55 = vmul.f32 %v577_v51, %v315_v53 }
 0x14d   : > { %v358_v38 = vpop.xlane.xlu0 %357 }
 0x14e   : > { %369 = vadd.xlane.f32.xlu1 %v299_v36  ;;  %v361_v39 = vadd.f32 %v358_v38, %v345_v37 }
 0x150   : > { %363 = vst.msk [vmem:[#allocation4] sm:$0xff] %vm340_vm2, %v361_v39 }
 0x1c7   : > { %v360_v43 = vpop.xlane.xlu1 %359 }
 0x1c8   : > { %v362_v44 = vadd.f32 %v360_v43, %v346_v42 }
 0x1ca   : > { %364 = vst.msk [vmem:[#allocation4 + $0x8] sm:$0xff] %vm340_vm2, %v362_v44 }
 0x1cb   : > { %v368_v47 = vpop.xlane.xlu1 %367 }
 0x1cc   : > { %v371_v49 = vadd.f32 %v368_v47, %v365_v45 }
 0x1ce   : > { %373 = vst.msk [vmem:[#allocation5] sm:$0xff] %vm340_vm2, %v371_v49 }
 0x1cf   : > { %v335_v52 = vpop.xlane.xlu1 %334 }
 0x1d0   : > { %v338_v54 = vadd.f32 %v335_v52, %v316_v50 }
 0x1d2   : > { %341 = vst.msk [vmem:[#allocation3] sm:$0xff] %vm340_vm2, %v338_v54 }
 0x1d3   : > { %v337_v56 = vpop.xlane.xlu1 %336 }
 0x1d4   : > { %v339_v57 = vadd.f32 %v337_v56, %v317_v55 }
 0x1d6   : > { %342 = vst.msk [vmem:[#allocation3 + $0x8] sm:$0xff] %vm340_vm2, %v339_v57  ;;  %378 = sbr.rel (%p520_p10) target bundleno = 503 (0x1f7), region = 78 }
 0x1d7   : > { %v370_v59 = vpop.xlane.xlu1 %369 }
 0x1d8   : > { %v372_v60 = vadd.f32 %v370_v59, %v366_v58 }
 0x1da   : > { %374 = vst.msk [vmem:[#allocation5 + $0x8] sm:$0xff] %vm340_vm2, %v372_v60 }
 0x1db   : > { %v381_v61 = vld [vmem:[#allocation3] sm:$0xff]  ;;  %v389_v0 = vld [vmem:[#allocation4] sm:$0xff]  ;;  %v390_v5 = vld [vmem:[#allocation4 + $0x8] sm:$0xff] }
 0x1dc   : > { %578 = vlog2.f32 %v381_v61  ;;  %v395_v63 = vld [vmem:[#allocation5] sm:$0xff]  ;;  %v379_v4 = vld [vmem:[#allocation2] sm:$0xff]  ;;  %v391_v7 = vmul.f32 0.9, %v389_v0  ;;  %v380_v10 = vld [vmem:[#allocation2 + $0x8] sm:$0xff] }
 0x1dd   : > { %v382_v62 = vld [vmem:[#allocation3 + $0x8] sm:$0xff]  ;;  %v397_v2 = vmul.f32 0.005, %v395_v63  ;;  %v392_v14 = vmul.f32 0.9, %v390_v5  ;;  %v403_v18 = vld [vmem:[%s743_s2] sm:$0xff] }
 0x1de   : > { %580 = vlog2.f32 %v382_v62  ;;  %v404_v21 = vld [vmem:[%s743_s2 + $0x8] sm:$0xff] }
 0x1df   : > { %v399_v12 = vmul.f32 0.1, %v397_v2 }
 0x1e1   : > { %v396_v1 = vld [vmem:[#allocation5 + $0x8] sm:$0xff] }
 0x1e2   : > { %v398_v8 = vmul.f32 0.005, %v396_v1 }
 0x1e4   : > { %v400_v17 = vmul.f32 0.1, %v398_v8 }
 0x1e9   : > { %v579_v3 = vpop.eup %578 }
 0x1ea   : > { %v384_v6 = vmul.f32 0.6931472, %v579_v3 }
 0x1eb   : > { %v581_v9 = vpop.eup %580 }
 0x1ec   : > { %v387_v11 = vadd.f32 %v384_v6, %v379_v4  ;;  %v386_v13 = vmul.f32 0.6931472, %v581_v9 }
 0x1ee   : > { %v393_v15 = vsub.f32 %v387_v11, %v391_v7  ;;  %v388_v16 = vadd.f32 %v386_v13, %v380_v10 }
 0x1f0   : > { %v401_v19 = vsub.f32 %v393_v15, %v399_v12  ;;  %v394_v20 = vsub.f32 %v388_v16, %v392_v14 }
 0x1f2   : > { %v405_v22 = vmul.f32 %v403_v18, %v401_v19  ;;  %v402_v23 = vsub.f32 %v394_v20, %v400_v17 }
 0x1f4   : > { %407 = vst.msk [vmem:[%s744_s3] sm:$0xff] %vm340_vm2, %v405_v22  ;;  %v406_v24 = vmul.f32 %v404_v21, %v402_v23 }
 0x1f6   : > { %408 = vst.msk [vmem:[%s744_s3 + $0x8] sm:$0xff] %vm340_vm2, %v406_v24 }
 0x1f7 PF: > { %s13_s16 = sadd.s32 1, %s620_s16   ;;  %s745_s12 = smov %s608_s13 }
 0x1f8   : > { %p10_p11 = scmp.ge.s32.totalorder %s13_s16, 4   ;;  %s746_s13 = smov %s680_s20 }
 0x1f9   : > { %s747_s14 = smov %s616_s15  ;;  %s748_s15 = smov %s750_s17 }
 0x1fa   :  { %12 = sbr.rel (!%p10_p11) target bundleno = 3 (0x3), region = 119 }

</bundles_post_ra>
